<compile_context>
chip_gen: v6e
topology: v6e:2x2x1
jax: 0.10.0
libtpu: 0.0.40
codegen_flags: <defaults>
</compile_context>

<pallas_src>
import functools
import math

import jax
import jax.numpy as jnp
from jax.experimental import pallas as pl
from jax.experimental.pallas import tpu as pltpu


_LAYERS = ("fc1", "fc2", "fc3", "fc4", "head")
_HIDDEN = (512, 256, 128, 128)          # fc4's 64 outputs are padded to 128 lanes


def _round_up(x, m):
    return ((x + m - 1) // m) * m


def _cdiv(a, b):
    return -(-a // b)


# ----------------------------------------------------------------------------
# Pallas kernel: fused 5-layer MLP forward (matmul + bias + ReLU x4, head).
# Weights (~0.5 MiB bf16) are VMEM-resident; each grid step processes a
# (tb, 128) slab of the batch.  bf16 operands, f32 accumulation, f32 epilogue.
# ----------------------------------------------------------------------------
def _dqn_kernel(x_ref,
                w1_ref, b1_ref,
                w2_ref, b2_ref,
                w3_ref, b3_ref,
                w4_ref, b4_ref,
                w5_ref, b5_ref,
                o_ref):
    def dense_relu(h_bf16, w_ref, b_ref):
        acc = jnp.dot(h_bf16, w_ref[...], preferred_element_type=jnp.float32)
        acc = jnp.maximum(acc + b_ref[...], 0.0)
        return acc.astype(jnp.bfloat16)      # bf16 between layers: half the VMEM

    h = x_ref[...]                            # bf16 (tb, in_p) — no cast needed
    h = dense_relu(h, w1_ref, b1_ref)
    h = dense_relu(h, w2_ref, b2_ref)
    h = dense_relu(h, w3_ref, b3_ref)
    h = dense_relu(h, w4_ref, b4_ref)         # fc4 padded to 128 lanes
    acc = jnp.dot(h, w5_ref[...], preferred_element_type=jnp.float32)
    o_ref[...] = (acc + b5_ref[...]).astype(o_ref.dtype)


# ----------------------------------------------------------------------------
# One-time parameter preparation: pad to lane-dense shapes, cast weights bf16.
# ----------------------------------------------------------------------------
def prepare_dqn_params(params, inputs, outputs):
    """Returns (layers, meta): layers is a tuple of (w_bf16, b_f32) padded to
    lane-dense TPU shapes; meta holds the padded/unpadded dims."""
    in_p = _round_up(inputs, 128)
    out_p = _round_up(outputs, 128)
    dims = (in_p,) + _HIDDEN + (out_p,)

    layers = []
    for name, d_in, d_out in zip(_LAYERS, dims[:-1], dims[1:]):
        w, b = params[name]                  # w: (fan_in, fan_out), b: (1, fan_out)
        w_p = jnp.zeros((d_in, d_out), jnp.float32).at[:w.shape[0], :w.shape[1]].set(w)
        b_p = jnp.zeros((1, d_out), jnp.float32).at[:, :b.shape[1]].set(b)
        layers.append((w_p.astype(jnp.bfloat16), b_p))

    meta = dict(n_in=inputs, n_out=outputs, in_p=in_p, out_p=out_p)
    return tuple(layers), meta


# ----------------------------------------------------------------------------
# Batch tiling: tb multiple of 16 (bf16 sublanes), minimal tail padding,
# >= 2 grid steps for medium/large batches (v7x has 2 TensorCores).
# ----------------------------------------------------------------------------
def _choose_batch_tiling(B, batch_tile):
    batch_tile = max(16, (int(batch_tile) // 16) * 16)
    B16 = _round_up(max(int(B), 1), 16)
    n_steps = _cdiv(B16, batch_tile)
    if B16 >= 32:
        n_steps = max(n_steps, 2)
    tb = _round_up(_cdiv(B16, n_steps), 16)
    return tb, n_steps


# ----------------------------------------------------------------------------
# Forward wrapper.
# ----------------------------------------------------------------------------
@functools.partial(jax.jit,
                   static_argnames=("n_in", "n_out", "in_p", "out_p", "batch_tile"))
def dqn_forward(x, layers, *, n_in, n_out, in_p, out_p, batch_tile=1024):
    """x: (B, n_in) float array.  layers: pre-padded (w_bf16, b_f32) tuples."""
    B = x.shape[0]
    tb, n_steps = _choose_batch_tiling(B, batch_tile)
    B_p = tb * n_steps

    # Input slab in bf16: halves the per-tile DMA and matches the MXU operand
    # dtype, so fc1 needs no in-kernel cast.
    x_p = jnp.zeros((B_p, in_p), jnp.bfloat16).at[:B, :n_in].set(
        x.astype(jnp.bfloat16))

    flat_args = [x_p]
    in_specs = [pl.BlockSpec((tb, in_p), lambda i: (i, 0))]
    for w, b in layers:
        flat_args.extend((w, b))
        # Constant index_map + single buffer: weights stay VMEM-resident,
        # never re-fetched / double-buffered across the batch grid.
        in_specs.append(pl.BlockSpec(w.shape, lambda i: (0, 0),
                                     pipeline_mode=pl.Buffered(1)))
        in_specs.append(pl.BlockSpec(b.shape, lambda i: (0, 0),
                                     pipeline_mode=pl.Buffered(1)))

    weight_bytes = sum(int(w.size) * 2 + int(b.size) * 4 for w, b in layers)
    flops = 2 * B_p * sum(int(w.shape[0]) * int(w.shape[1]) for w, _ in layers)
    bytes_accessed = int(x_p.size) * 2 + B_p * out_p * 4 + weight_bytes

    # Explicit per-step VMEM budget (v5e scoped default is only 16 MiB; v7x
    # physical VMEM is 64 MiB): double-buffered x/out slabs + resident weights
    # + bf16 inter-layer activations + f32 accumulator headroom, ~2x margin,
    # capped well below v7x's 64 MiB.
    per_step_vmem = (2 * tb * in_p * 2            # x slab, bf16, double-buffered
                     + 2 * tb * out_p * 4          # out slab, f32, double-buffered
                     + weight_bytes                # single-buffered weights/biases
                     + tb * sum(_HIDDEN) * 2       # bf16 inter-layer activations
                     + 2 * tb * 512 * 4)           # f32 accumulator headroom
    vmem_limit = int(min(max(2 * per_step_vmem, 24 << 20), 48 << 20))

    out_padded = pl.pallas_call(
        _dqn_kernel,
        out_shape=jax.ShapeDtypeStruct((B_p, out_p), jnp.float32),
        grid=(n_steps,),
        in_specs=in_specs,
        out_specs=pl.BlockSpec((tb, out_p), lambda i: (i, 0)),
        compiler_params=pltpu.CompilerParams(
            dimension_semantics=("parallel",),
            vmem_limit_bytes=vmem_limit),
        cost_estimate=pl.CostEstimate(flops=flops, transcendentals=0,
                                      bytes_accessed=bytes_accessed),
    )(*flat_args)

    return out_padded[:B, :n_out]


# ----------------------------------------------------------------------------
# Deterministic parameter init (mirrors torch.nn.Linear default: U(-k, k),
# k = 1/sqrt(fan_in)).  Weights stored as (in, out), biases as (1, out).
# ----------------------------------------------------------------------------
def init_dqn_params(key, inputs, outputs):
    sizes = [(inputs, 512), (512, 256), (256, 128), (128, 64), (64, outputs)]
    params = {}
    for name, (fan_in, fan_out) in zip(_LAYERS, sizes):
        key, kw, kb = jax.random.split(key, 3)
        bound = 1.0 / math.sqrt(fan_in)
        w = jax.random.uniform(kw, (fan_in, fan_out), jnp.float32, -bound, bound)
        b = jax.random.uniform(kb, (1, fan_out), jnp.float32, -bound, bound)
        params[name] = (w, b)
    return params


def dqn_reference(x, params, weight_dtype=jnp.float32):
    """Plain-JAX reference.  weight_dtype=bf16 reproduces the kernel's
    mixed-precision numerics (bf16 operands, f32 accumulation, f32 bias+ReLU,
    bf16 activations between layers)."""
    h = x
    for name in ["fc1", "fc2", "fc3", "fc4"]:
        w, b = params[name]
        h = jnp.dot(h.astype(weight_dtype), w.astype(weight_dtype),
                    preferred_element_type=jnp.float32) + b
        h = jnp.maximum(h, 0.0)
    w, b = params["head"]
    return jnp.dot(h.astype(weight_dtype), w.astype(weight_dtype),
                   preferred_element_type=jnp.float32) + b


if __name__ == "__main__":
    # Small DQN config: e.g. 24 laser-scan features -> 5 discrete actions.
    batch, inputs, outputs = 2, 24, 5

    key = jax.random.PRNGKey(0)
    key, kx = jax.random.split(key)
    x = jax.random.normal(kx, (batch, inputs), jnp.float32)

    params = init_dqn_params(key, inputs, outputs)
    layers, meta = prepare_dqn_params(params, inputs, outputs)   # one-time pad/cast

    out = dqn_forward(x, layers, **meta)
    out = jax.block_until_ready(out)

    assert out.shape == (batch, outputs), out.shape

    # Tight check against a reference that matches the kernel's numerics
    # (bf16 operands/activations, f32 accumulation, f32 bias + ReLU).
    ref_bf16 = dqn_reference(x, params, jnp.bfloat16)
    assert jnp.allclose(out, ref_bf16, atol=1e-3, rtol=1e-3), (out, ref_bf16)

    # Loose sanity check against the full-f32 PyTorch-equivalent reference.
    ref_f32 = dqn_reference(x, params, jnp.float32)
    assert jnp.allclose(out, ref_f32, atol=5e-2, rtol=5e-2), (out, ref_f32)

    print("KERNEL_OK")
</pallas_src>

<mosaic_0001>
module attributes {stable_mosaic.version = 11 : i64} {
  func.func @_dqn_kernel(%arg0: i32, %arg1: memref<16x128xbf16, #tpu.memory_space<vmem>>, %arg2: memref<128x512xbf16, #tpu.memory_space<vmem>>, %arg3: memref<1x512xf32, #tpu.memory_space<vmem>>, %arg4: memref<512x256xbf16, #tpu.memory_space<vmem>>, %arg5: memref<1x256xf32, #tpu.memory_space<vmem>>, %arg6: memref<256x128xbf16, #tpu.memory_space<vmem>>, %arg7: memref<1x128xf32, #tpu.memory_space<vmem>>, %arg8: memref<128x128xbf16, #tpu.memory_space<vmem>>, %arg9: memref<1x128xf32, #tpu.memory_space<vmem>>, %arg10: memref<128x128xbf16, #tpu.memory_space<vmem>>, %arg11: memref<1x128xf32, #tpu.memory_space<vmem>>, %arg12: memref<16x128xf32, #tpu.memory_space<vmem>>) attributes {dimension_semantics = [#tpu.dimension_semantics<parallel>], iteration_bounds = array<i64: 1>, scalar_prefetch = 0 : i64, scratch_operands = 0 : i64, tpu.core_type = #tpu.core_type<tc>, window_params = [{transform_indices = @transform_0, window_bounds = array<i64: 16, 128>}, {pipeline_mode = #tpu.pipeline_mode<synchronous>, transform_indices = @transform_1, window_bounds = array<i64: 128, 512>}, {pipeline_mode = #tpu.pipeline_mode<synchronous>, transform_indices = @transform_2, window_bounds = array<i64: 1, 512>}, {pipeline_mode = #tpu.pipeline_mode<synchronous>, transform_indices = @transform_3, window_bounds = array<i64: 512, 256>}, {pipeline_mode = #tpu.pipeline_mode<synchronous>, transform_indices = @transform_4, window_bounds = array<i64: 1, 256>}, {pipeline_mode = #tpu.pipeline_mode<synchronous>, transform_indices = @transform_5, window_bounds = array<i64: 256, 128>}, {pipeline_mode = #tpu.pipeline_mode<synchronous>, transform_indices = @transform_6, window_bounds = array<i64: 1, 128>}, {pipeline_mode = #tpu.pipeline_mode<synchronous>, transform_indices = @transform_7, window_bounds = array<i64: 128, 128>}, {pipeline_mode = #tpu.pipeline_mode<synchronous>, transform_indices = @transform_8, window_bounds = array<i64: 1, 128>}, {pipeline_mode = #tpu.pipeline_mode<synchronous>, transform_indices = @transform_9, window_bounds = array<i64: 128, 128>}, {pipeline_mode = #tpu.pipeline_mode<synchronous>, transform_indices = @transform_10, window_bounds = array<i64: 1, 128>}, {transform_indices = @transform_11, window_bounds = array<i64: 16, 128>}]} {
    %c0 = arith.constant 0 : index
    %c0_0 = arith.constant 0 : index
    %0 = vector.load %arg1[%c0, %c0_0] : memref<16x128xbf16, #tpu.memory_space<vmem>>, vector<16x128xbf16>
    %c0_1 = arith.constant 0 : index
    %c0_2 = arith.constant 0 : index
    %1 = vector.load %arg2[%c0_1, %c0_2] : memref<128x512xbf16, #tpu.memory_space<vmem>>, vector<128x512xbf16>
    %cst = arith.constant dense<0.000000e+00> : vector<16x512xf32>
    %2 = tpu.matmul %0, %1, %cst {dimension_numbers = #tpu.dot_dimension_numbers<[1], [0], [0], [1], [0, 0, 1, 1], [], []>} : vector<16x128xbf16>, vector<128x512xbf16>, vector<16x512xf32> -> vector<16x512xf32>
    %c0_3 = arith.constant 0 : index
    %c0_4 = arith.constant 0 : index
    %3 = vector.load %arg3[%c0_3, %c0_4] : memref<1x512xf32, #tpu.memory_space<vmem>>, vector<1x512xf32>
    %4 = vector.broadcast %3 : vector<1x512xf32> to vector<16x512xf32>
    %5 = arith.addf %2, %4 : vector<16x512xf32>
    %cst_5 = arith.constant 0.000000e+00 : f32
    %6 = vector.broadcast %cst_5 : f32 to vector<16x512xf32>
    %7 = arith.maximumf %5, %6 : vector<16x512xf32>
    %8 = arith.truncf %7 : vector<16x512xf32> to vector<16x512xbf16>
    %c0_6 = arith.constant 0 : index
    %c0_7 = arith.constant 0 : index
    %9 = vector.load %arg4[%c0_6, %c0_7] : memref<512x256xbf16, #tpu.memory_space<vmem>>, vector<512x256xbf16>
    %cst_8 = arith.constant dense<0.000000e+00> : vector<16x256xf32>
    %10 = tpu.matmul %8, %9, %cst_8 {dimension_numbers = #tpu.dot_dimension_numbers<[1], [0], [0], [1], [0, 0, 1, 1], [], []>} : vector<16x512xbf16>, vector<512x256xbf16>, vector<16x256xf32> -> vector<16x256xf32>
    %c0_9 = arith.constant 0 : index
    %c0_10 = arith.constant 0 : index
    %11 = vector.load %arg5[%c0_9, %c0_10] : memref<1x256xf32, #tpu.memory_space<vmem>>, vector<1x256xf32>
    %12 = vector.broadcast %11 : vector<1x256xf32> to vector<16x256xf32>
    %13 = arith.addf %10, %12 : vector<16x256xf32>
    %cst_11 = arith.constant 0.000000e+00 : f32
    %14 = vector.broadcast %cst_11 : f32 to vector<16x256xf32>
    %15 = arith.maximumf %13, %14 : vector<16x256xf32>
    %16 = arith.truncf %15 : vector<16x256xf32> to vector<16x256xbf16>
    %c0_12 = arith.constant 0 : index
    %c0_13 = arith.constant 0 : index
    %17 = vector.load %arg6[%c0_12, %c0_13] : memref<256x128xbf16, #tpu.memory_space<vmem>>, vector<256x128xbf16>
    %cst_14 = arith.constant dense<0.000000e+00> : vector<16x128xf32>
    %18 = tpu.matmul %16, %17, %cst_14 {dimension_numbers = #tpu.dot_dimension_numbers<[1], [0], [0], [1], [0, 0, 1, 1], [], []>} : vector<16x256xbf16>, vector<256x128xbf16>, vector<16x128xf32> -> vector<16x128xf32>
    %c0_15 = arith.constant 0 : index
    %c0_16 = arith.constant 0 : index
    %19 = vector.load %arg7[%c0_15, %c0_16] : memref<1x128xf32, #tpu.memory_space<vmem>>, vector<1x128xf32>
    %20 = vector.broadcast %19 : vector<1x128xf32> to vector<16x128xf32>
    %21 = arith.addf %18, %20 : vector<16x128xf32>
    %cst_17 = arith.constant 0.000000e+00 : f32
    %22 = vector.broadcast %cst_17 : f32 to vector<16x128xf32>
    %23 = arith.maximumf %21, %22 : vector<16x128xf32>
    %24 = arith.truncf %23 : vector<16x128xf32> to vector<16x128xbf16>
    %c0_18 = arith.constant 0 : index
    %c0_19 = arith.constant 0 : index
    %25 = vector.load %arg8[%c0_18, %c0_19] : memref<128x128xbf16, #tpu.memory_space<vmem>>, vector<128x128xbf16>
    %cst_20 = arith.constant dense<0.000000e+00> : vector<16x128xf32>
    %26 = tpu.matmul %24, %25, %cst_20 {dimension_numbers = #tpu.dot_dimension_numbers<[1], [0], [0], [1], [0, 0, 1, 1], [], []>} : vector<16x128xbf16>, vector<128x128xbf16>, vector<16x128xf32> -> vector<16x128xf32>
    %c0_21 = arith.constant 0 : index
    %c0_22 = arith.constant 0 : index
    %27 = vector.load %arg9[%c0_21, %c0_22] : memref<1x128xf32, #tpu.memory_space<vmem>>, vector<1x128xf32>
    %28 = vector.broadcast %27 : vector<1x128xf32> to vector<16x128xf32>
    %29 = arith.addf %26, %28 : vector<16x128xf32>
    %cst_23 = arith.constant 0.000000e+00 : f32
    %30 = vector.broadcast %cst_23 : f32 to vector<16x128xf32>
    %31 = arith.maximumf %29, %30 : vector<16x128xf32>
    %32 = arith.truncf %31 : vector<16x128xf32> to vector<16x128xbf16>
    %c0_24 = arith.constant 0 : index
    %c0_25 = arith.constant 0 : index
    %33 = vector.load %arg10[%c0_24, %c0_25] : memref<128x128xbf16, #tpu.memory_space<vmem>>, vector<128x128xbf16>
    %cst_26 = arith.constant dense<0.000000e+00> : vector<16x128xf32>
    %34 = tpu.matmul %32, %33, %cst_26 {dimension_numbers = #tpu.dot_dimension_numbers<[1], [0], [0], [1], [0, 0, 1, 1], [], []>} : vector<16x128xbf16>, vector<128x128xbf16>, vector<16x128xf32> -> vector<16x128xf32>
    %c0_27 = arith.constant 0 : index
    %c0_28 = arith.constant 0 : index
    %35 = vector.load %arg11[%c0_27, %c0_28] : memref<1x128xf32, #tpu.memory_space<vmem>>, vector<1x128xf32>
    %36 = vector.broadcast %35 : vector<1x128xf32> to vector<16x128xf32>
    %37 = arith.addf %34, %36 : vector<16x128xf32>
    %c0_29 = arith.constant 0 : index
    %c0_30 = arith.constant 0 : index
    %38 = vector.load %arg12[%c0_29, %c0_30] : memref<16x128xf32, #tpu.memory_space<vmem>>, vector<16x128xf32>
    tpu.vector_store %arg12[%c0_29, %c0_30], %37 {strides = array<i32>} : memref<16x128xf32, #tpu.memory_space<vmem>>, vector<16x128xf32>,
    return
  }
  func.func @transform_0(%arg0: i32) -> (i32, i32) {
    %c0_i32 = arith.constant 0 : i32
    %c0_i32_0 = arith.constant 0 : i32
    return %arg0, %c0_i32 : i32, i32
  }
  func.func @transform_1(%arg0: i32) -> (i32, i32) {
    %c0_i32 = arith.constant 0 : i32
    %c0_i32_0 = arith.constant 0 : i32
    %c0_i32_1 = arith.constant 0 : i32
    return %c0_i32, %c0_i32_0 : i32, i32
  }
  func.func @transform_2(%arg0: i32) -> (i32, i32) {
    %c0_i32 = arith.constant 0 : i32
    %c0_i32_0 = arith.constant 0 : i32
    %c0_i32_1 = arith.constant 0 : i32
    return %c0_i32, %c0_i32_0 : i32, i32
  }
  func.func @transform_3(%arg0: i32) -> (i32, i32) {
    %c0_i32 = arith.constant 0 : i32
    %c0_i32_0 = arith.constant 0 : i32
    %c0_i32_1 = arith.constant 0 : i32
    return %c0_i32, %c0_i32_0 : i32, i32
  }
  func.func @transform_4(%arg0: i32) -> (i32, i32) {
    %c0_i32 = arith.constant 0 : i32
    %c0_i32_0 = arith.constant 0 : i32
    %c0_i32_1 = arith.constant 0 : i32
    return %c0_i32, %c0_i32_0 : i32, i32
  }
  func.func @transform_5(%arg0: i32) -> (i32, i32) {
    %c0_i32 = arith.constant 0 : i32
    %c0_i32_0 = arith.constant 0 : i32
    %c0_i32_1 = arith.constant 0 : i32
    return %c0_i32, %c0_i32_0 : i32, i32
  }
  func.func @transform_6(%arg0: i32) -> (i32, i32) {
    %c0_i32 = arith.constant 0 : i32
    %c0_i32_0 = arith.constant 0 : i32
    %c0_i32_1 = arith.constant 0 : i32
    return %c0_i32, %c0_i32_0 : i32, i32
  }
  func.func @transform_7(%arg0: i32) -> (i32, i32) {
    %c0_i32 = arith.constant 0 : i32
    %c0_i32_0 = arith.constant 0 : i32
    %c0_i32_1 = arith.constant 0 : i32
    return %c0_i32, %c0_i32_0 : i32, i32
  }
  func.func @transform_8(%arg0: i32) -> (i32, i32) {
    %c0_i32 = arith.constant 0 : i32
    %c0_i32_0 = arith.constant 0 : i32
    %c0_i32_1 = arith.constant 0 : i32
    return %c0_i32, %c0_i32_0 : i32, i32
  }
  func.func @transform_9(%arg0: i32) -> (i32, i32) {
    %c0_i32 = arith.constant 0 : i32
    %c0_i32_0 = arith.constant 0 : i32
    %c0_i32_1 = arith.constant 0 : i32
    return %c0_i32, %c0_i32_0 : i32, i32
  }
  func.func @transform_10(%arg0: i32) -> (i32, i32) {
    %c0_i32 = arith.constant 0 : i32
    %c0_i32_0 = arith.constant 0 : i32
    %c0_i32_1 = arith.constant 0 : i32
    return %c0_i32, %c0_i32_0 : i32, i32
  }
  func.func @transform_11(%arg0: i32) -> (i32, i32) {
    %c0_i32 = arith.constant 0 : i32
    %c0_i32_0 = arith.constant 0 : i32
    return %arg0, %c0_i32 : i32, i32
  }
}

</mosaic_0001>

<bundles_post_ra>
// kernel: dqn_forward.1
= control target key start
LH: loop header
LB: loop body
LE: loop exit
PB: predicated region body
PF: predicated region fallthrough
CT: control target
= control target key end

     0   :  { %16 = vsyncpa [#allocation3], 0  ;;  %s1993_s0 = inlined_call_operand.vmem [shape: bf16[16,128], index: 0, kind: input, shape index: {}]   ;;  %s1994_s1 = inlined_call_operand.hbm [shape: bf16[128,512], index: 1, kind: input, shape index: {}]   ;;  %s1995_s2 = inlined_call_operand.vmem [shape: f32[1,512], index: 2, kind: input, shape index: {}]   ;;  %s1996_s3 = inlined_call_operand.hbm [shape: bf16[512,256], index: 3, kind: input, shape index: {}]   ;;  %s1997_s4 = inlined_call_operand.vmem [shape: f32[1,256], index: 4, kind: input, shape index: {}]   ;;  %s1998_s5 = inlined_call_operand.hbm [shape: bf16[256,128], index: 5, kind: input, shape index: {}]   ;;  %s1999_s6 = inlined_call_operand.vmem [shape: f32[1,128], index: 6, kind: input, shape index: {}]   ;;  %s2000_s7 = inlined_call_operand.hbm [shape: bf16[128,128], index: 7, kind: input, shape index: {}]   ;;  %s2001_s8 = inlined_call_operand.vmem [shape: f32[1,128], index: 8, kind: input, shape index: {}]   ;;  %s2002_s9 = inlined_call_operand.hbm [shape: bf16[128,128], index: 9, kind: input, shape index: {}]   ;;  %s2003_s10 = inlined_call_operand.vmem [shape: f32[1,128], index: 10, kind: input, shape index: {}]   ;;  %s2004_s11 = inlined_call_operand.vmem [shape: f32[16,128], index: 11, kind: output, shape index: {}]  }
   0x1   :  { %17 = vsyncpa [#allocation5], 0 }
   0x2   :  { %18 = vsyncpa [#allocation8], 0  ;;  %s1839_s17 = smov [#allocation4]  }
   0x3   :  { %s40_s18 = sshll.u32 %s1839_s17, 4  ;;  %s41_s18 = int_to_ptr.vmem [resolvable:$true] %s40_s18 }
   0x4   :  { %s1741_s19 = scalar_lea.vmem %s41_s18, 8192  ;;  %p1746_p1 = scmp.lt.s32.totalorder %s41_s18, %s41_s18 }
   0x5   :  { %p1742_p0 = scmp.ne.s32.totalorder %s41_s18, %s1741_s19  ;;  %p1747_p2 = scmp.lt.s32.totalorder %s1741_s19, %s1741_s19 }
   0x7   :  { %p1748_p3 = por %p1747_p2, %p1746_p1 }
   0x9   :  { %p1749_p4 = pnand %p1748_p3, %p1742_p0 }
   0xb   :  { %1752 = shalt.err (!%p1749_p4)
}
   0xc   :  { %s1840_s20 = smov 128   ;;  %s1841_s21 = smov 8  }
   0xd   :  { %46 = dma.hbm_to_vmem [thread:$0]  %s1996_s3, 8192, %s41_s18, [#allocation5], %s1840_s20, %s1840_s20, %s1841_s21  }
   0xe   :  { %s1842_s24 = smov [#allocation7]   ;;  %s1843_s26 = smov [#allocation2]  }
   0xf   :  { %s68_s25 = sshll.u32 %s1842_s24, 4  ;;  %s26_s27 = sshll.u32 %s1843_s26, 4  ;;  %s69_s25 = int_to_ptr.vmem [resolvable:$true] %s68_s25  ;;  %s27_s27 = int_to_ptr.vmem [resolvable:$true] %s26_s27 }
  0x10   :  { %s1761_s28 = scalar_lea.vmem %s69_s25, 1024  ;;  %p1766_p6 = scmp.lt.s32.totalorder %s69_s25, %s69_s25 }
  0x11   :  { %p1762_p5 = scmp.ne.s32.totalorder %s69_s25, %s1761_s28  ;;  %p1767_p7 = scmp.lt.s32.totalorder %s1761_s28, %s1761_s28 }
  0x13   :  { %p1768_p8 = por %p1767_p7, %p1766_p6 }
  0x15   :  { %p1769_p9 = pnand %p1768_p8, %p1762_p5 }
  0x17   :  { %1772 = shalt.err (!%p1769_p9)
}
  0x18   :  { %s1844_s29 = smov 64   ;;  %s1845_s30 = smov 4  }
  0x19   :  { %74 = dma.hbm_to_vmem [thread:$0]  %s2000_s7, 1024, %s69_s25, [#allocation8], %s1844_s29, %s1844_s29, %s1845_s30  }
  0x1a   :  { %s1781_s3 = scalar_lea.vmem %s27_s27, 4096  ;;  %p1786_p11 = scmp.lt.s32.totalorder %s27_s27, %s27_s27 }
  0x1b   :  { %p1782_p10 = scmp.ne.s32.totalorder %s27_s27, %s1781_s3  ;;  %p1787_p12 = scmp.lt.s32.totalorder %s1781_s3, %s1781_s3 }
  0x1d   :  { %p1788_p13 = por %p1787_p12, %p1786_p11 }
  0x1f   :  { %p1789_p0 = pnand %p1788_p13, %p1782_p10 }
  0x21   :  { %1792 = shalt.err (!%p1789_p0)
}
  0x22   :  { %s1846_s14 = smov 256   ;;  %s1847_s15 = smov 16  }
  0x23   :  { %32 = dma.hbm_to_vmem [thread:$0]  %s1994_s1, 4096, %s27_s27, [#allocation3], %s1846_s14, %s1846_s14, %s1847_s15  }
  0x24   :  { %s1848_s18 = smov [#allocation6]   ;;  %s1849_s20 = smov [#allocation9]  }
  0x25   :  { %s54_s19 = sshll.u32 %s1848_s18, 4  ;;  %s82_s21 = sshll.u32 %s1849_s20, 4  ;;  %s55_s19 = int_to_ptr.vmem [resolvable:$true] %s54_s19  ;;  %s83_s21 = int_to_ptr.vmem [resolvable:$true] %s82_s21 }
  0x26   :  { %s1801_s7 = scalar_lea.vmem %s55_s19, 2048  ;;  %p1806_p2 = scmp.lt.s32.totalorder %s55_s19, %s55_s19 }
  0x27   :  { %p1802_p1 = scmp.ne.s32.totalorder %s55_s19, %s1801_s7  ;;  %p1807_p3 = scmp.lt.s32.totalorder %s1801_s7, %s1801_s7 }
  0x29   :  { %p1808_p4 = por %p1807_p3, %p1806_p2 }
  0x2b   :  { %p1809_p5 = pnand %p1808_p4, %p1802_p1 }
  0x2d   :  { %1812 = shalt.err (!%p1809_p5)
}
  0x2e   :  { %60 = dma.hbm_to_vmem [thread:$0]  %s1998_s5, 2048, %s55_s19, [#allocation5], %s1844_s29, %s1844_s29, %s1845_s30  }
  0x2f   :  { %s1821_s1 = scalar_lea.vmem %s83_s21, 1024  ;;  %p1826_p7 = scmp.lt.s32.totalorder %s83_s21, %s83_s21 }
  0x30   :  { %p1822_p6 = scmp.ne.s32.totalorder %s83_s21, %s1821_s1  ;;  %p1827_p8 = scmp.lt.s32.totalorder %s1821_s1, %s1821_s1 }
  0x32   :  { %p1828_p9 = por %p1827_p8, %p1826_p7 }
  0x34   :  { %p1829_p10 = pnand %p1828_p9, %p1822_p6 }
  0x36   :  { %1832 = shalt.err (!%p1829_p10)
}
  0x37   :  { %88 = dma.hbm_to_vmem [thread:$0]  %s2002_s9, 1024, %s83_s21, [#allocation8], %s1844_s29, %s1844_s29, %s1845_s30  }
  0x38   :  { %1833 = dma.done.wait [#allocation3], 4096  }
  0x39   :  { %1834 = vsyncadd [#allocation3], 4294963200 }
  0x3a   :  { %1835 = dma.done.wait [#allocation5], 10240  }
  0x3b   :  { %1836 = vsyncadd [#allocation5], 4294957056 }
  0x3c   :  { %1837 = dma.done.wait [#allocation8], 2048  }
  0x3d   :  { %1838 = vsyncadd [#allocation8], 4294965248  ;;  %v1850_v0 = vmov 0   ;;  %v1556_v1 = vld [vmem:[#allocation2 + $0xe4] ss:$16 sps:$4 sm:$0xff]   ;;  %vm1852_vm0 = vmmov 0  }
  0x3e   :  { %361 = vmatprep.mubr.bf16.mxu0 %v1850_v0  ;;  %404 = vmatprep.mubr.bf16.mxu1 %v1850_v0  ;;  %v1558_v2 = vld [vmem:[#allocation2 + $0xec] ss:$16 sps:$4 sm:$0xff]   ;;  %v1560_v3 = vld [vmem:[#allocation2 + $0xe0] ss:$16 sps:$4 sm:$0xff]   ;;  %v1561_v4 = vld [vmem:[#allocation2 + $0xe8] ss:$16 sps:$4 sm:$0xff]  }
  0x3f   :  { %329 = vmatprep.subr.bf16.mxu0 %v1556_v1  ;;  %372 = vmatprep.subr.bf16.mxu1 %v1558_v2  ;;  %v1562_v5 = vld [vmem:[#allocation2 + $0xc4] ss:$16 sps:$4 sm:$0xff]   ;;  %v1564_v6 = vld [vmem:[#allocation2 + $0xcc] ss:$16 sps:$4 sm:$0xff]   ;;  %v1566_v7 = vld [vmem:[#allocation2 + $0xc0] ss:$16 sps:$4 sm:$0xff]  }
  0x40   :  { %330 = vmatpush1.bf16.msra.mxu0 %v1560_v3  ;;  %373 = vmatpush1.bf16.msra.mxu1 %v1561_v4  ;;  %v1567_v8 = vld [vmem:[#allocation2 + $0xc8] ss:$16 sps:$4 sm:$0xff]   ;;  %v1568_v9 = vld [vmem:[#allocation2 + $0xa4] ss:$16 sps:$4 sm:$0xff]   ;;  %v1570_v10 = vld [vmem:[#allocation2 + $0xac] ss:$16 sps:$4 sm:$0xff]  }
  0x41   :  { %331 = vmatprep.subr.bf16.mxu0 %v1562_v5  ;;  %374 = vmatprep.subr.bf16.mxu1 %v1564_v6  ;;  %v1572_v11 = vld [vmem:[#allocation2 + $0xa0] ss:$16 sps:$4 sm:$0xff]   ;;  %v1573_v12 = vld [vmem:[#allocation2 + $0xa8] ss:$16 sps:$4 sm:$0xff]   ;;  %v1574_v13 = vld [vmem:[#allocation2 + $0x84] ss:$16 sps:$4 sm:$0xff]  }
  0x42   :  { %v1576_v14 = vld [vmem:[#allocation2 + $0x8c] ss:$16 sps:$4 sm:$0xff]   ;;  %v1578_v15 = vld [vmem:[#allocation2 + $0x80] ss:$16 sps:$4 sm:$0xff]   ;;  %v1579_v16 = vld [vmem:[#allocation2 + $0x88] ss:$16 sps:$4 sm:$0xff]  }
  0x43   :  { %v1580_v17 = vld [vmem:[#allocation2 + $0x64] ss:$16 sps:$4 sm:$0xff]   ;;  %v1582_v18 = vld [vmem:[#allocation2 + $0x6c] ss:$16 sps:$4 sm:$0xff]   ;;  %v1584_v19 = vld [vmem:[#allocation2 + $0x60] ss:$16 sps:$4 sm:$0xff]  }
  0x44   :  { %332 = vmatpush1.bf16.msra.mxu0 %v1566_v7  ;;  %375 = vmatpush1.bf16.msra.mxu1 %v1567_v8  ;;  %v1585_v20 = vld [vmem:[#allocation2 + $0x68] ss:$16 sps:$4 sm:$0xff]   ;;  %v1586_v21 = vld [vmem:[#allocation2 + $0x44] ss:$16 sps:$4 sm:$0xff]   ;;  %v1588_v22 = vld [vmem:[#allocation2 + $0x4c] ss:$16 sps:$4 sm:$0xff]  }
  0x45   :  { %333 = vmatprep.subr.bf16.mxu0 %v1568_v9  ;;  %376 = vmatprep.subr.bf16.mxu1 %v1570_v10  ;;  %v1590_v23 = vld [vmem:[#allocation2 + $0x40] ss:$16 sps:$4 sm:$0xff]   ;;  %v1591_v24 = vld [vmem:[#allocation2 + $0x48] ss:$16 sps:$4 sm:$0xff]   ;;  %v1592_v25 = vld [vmem:[#allocation2 + $0x24] ss:$16 sps:$4 sm:$0xff]  }
  0x46   :  { %v1594_v26 = vld [vmem:[#allocation2 + $0x2c] ss:$16 sps:$4 sm:$0xff]   ;;  %v1596_v27 = vld [vmem:[#allocation2 + $0x20] ss:$16 sps:$4 sm:$0xff]   ;;  %v1597_v28 = vld [vmem:[#allocation2 + $0x28] ss:$16 sps:$4 sm:$0xff]  }
  0x47   :  { %v1598_v29 = vld [vmem:[#allocation2 + $0x4] ss:$16 sps:$4 sm:$0xff]   ;;  %v1600_v30 = vld [vmem:[#allocation2 + $0xc] ss:$16 sps:$4 sm:$0xff]   ;;  %v1602_v31 = vld [vmem:[#allocation2] ss:$16 sps:$4 sm:$0xff]  }
  0x48   :  { %334 = vmatpush1.bf16.msra.mxu0 %v1572_v11  ;;  %377 = vmatpush1.bf16.msra.mxu1 %v1573_v12  ;;  %v1603_v32 = vld [vmem:[#allocation2 + $0x8] ss:$16 sps:$4 sm:$0xff]   ;;  %v1607_v33 = vld [vmem:[#allocation4 + $0x74] ss:$8 sps:$4 sm:$0xff]   ;;  %v1604_v35 = vld [vmem:[%s1993_s0] sm:$0xff]  }
  0x49   :  { %335 = vmatprep.subr.bf16.mxu0 %v1574_v13  ;;  %378 = vmatprep.subr.bf16.mxu1 %v1576_v14  ;;  %v1610_v34 = vld [vmem:[#allocation4 + $0x174] ss:$8 sps:$4 sm:$0xff]   ;;  %v1605_v36 = vld [vmem:[#allocation4 + $0x70] ss:$8 sps:$4 sm:$0xff]   ;;  %v1613_v38 = vld [vmem:[#allocation4 + $0x64] ss:$8 sps:$4 sm:$0xff]  }
  0x4a   :  { %v1608_v37 = vld [vmem:[#allocation4 + $0x170] ss:$8 sps:$4 sm:$0xff]   ;;  %v1616_v39 = vld [vmem:[#allocation4 + $0x164] ss:$8 sps:$4 sm:$0xff]   ;;  %v1611_v40 = vld [vmem:[#allocation4 + $0x60] ss:$8 sps:$4 sm:$0xff]  }
  0x4b   :  { %v1614_v41 = vld [vmem:[#allocation4 + $0x160] ss:$8 sps:$4 sm:$0xff]   ;;  %v1619_v42 = vld [vmem:[#allocation4 + $0x54] ss:$8 sps:$4 sm:$0xff]   ;;  %v1617_v44 = vld [vmem:[#allocation4 + $0x50] ss:$8 sps:$4 sm:$0xff]  }
  0x4c   :  { %336 = vmatpush1.bf16.msra.mxu0 %v1578_v15  ;;  %379 = vmatpush1.bf16.msra.mxu1 %v1579_v16  ;;  %v1622_v43 = vld [vmem:[#allocation4 + $0x154] ss:$8 sps:$4 sm:$0xff]   ;;  %v1620_v45 = vld [vmem:[#allocation4 + $0x150] ss:$8 sps:$4 sm:$0xff]   ;;  %v1625_v46 = vld [vmem:[#allocation4 + $0x44] ss:$8 sps:$4 sm:$0xff]  }
  0x4d   :  { %337 = vmatprep.subr.bf16.mxu0 %v1580_v17  ;;  %380 = vmatprep.subr.bf16.mxu1 %v1582_v18  ;;  %v1628_v47 = vld [vmem:[#allocation4 + $0x144] ss:$8 sps:$4 sm:$0xff]   ;;  %v1623_v48 = vld [vmem:[#allocation4 + $0x40] ss:$8 sps:$4 sm:$0xff]   ;;  %v1631_v50 = vld [vmem:[#allocation4 + $0x34] ss:$8 sps:$4 sm:$0xff]  }
  0x4e   :  { %v1626_v49 = vld [vmem:[#allocation4 + $0x140] ss:$8 sps:$4 sm:$0xff]   ;;  %v1634_v51 = vld [vmem:[#allocation4 + $0x134] ss:$8 sps:$4 sm:$0xff]   ;;  %v1629_v52 = vld [vmem:[#allocation4 + $0x30] ss:$8 sps:$4 sm:$0xff]  }
  0x4f   :  { %v1632_v53 = vld [vmem:[#allocation4 + $0x130] ss:$8 sps:$4 sm:$0xff]   ;;  %v1637_v54 = vld [vmem:[#allocation4 + $0x24] ss:$8 sps:$4 sm:$0xff]   ;;  %v1635_v56 = vld [vmem:[#allocation4 + $0x20] ss:$8 sps:$4 sm:$0xff]  }
  0x50   :  { %338 = vmatpush1.bf16.msra.mxu0 %v1584_v19  ;;  %381 = vmatpush1.bf16.msra.mxu1 %v1585_v20  ;;  %v1640_v55 = vld [vmem:[#allocation4 + $0x124] ss:$8 sps:$4 sm:$0xff]   ;;  %v1638_v57 = vld [vmem:[#allocation4 + $0x120] ss:$8 sps:$4 sm:$0xff]   ;;  %v1643_v58 = vld [vmem:[#allocation4 + $0x14] ss:$8 sps:$4 sm:$0xff]  }
  0x51   :  { %339 = vmatprep.subr.bf16.mxu0 %v1586_v21  ;;  %382 = vmatprep.subr.bf16.mxu1 %v1588_v22  ;;  %v1646_v59 = vld [vmem:[#allocation4 + $0x114] ss:$8 sps:$4 sm:$0xff]   ;;  %v1641_v60 = vld [vmem:[#allocation4 + $0x10] ss:$8 sps:$4 sm:$0xff]   ;;  %v1649_v62 = vld [vmem:[#allocation4 + $0x4] ss:$8 sps:$4 sm:$0xff]  }
  0x52   :  { %v1644_v61 = vld [vmem:[#allocation4 + $0x110] ss:$8 sps:$4 sm:$0xff]   ;;  %v1652_v63 = vld [vmem:[#allocation4 + $0x104] ss:$8 sps:$4 sm:$0xff]   ;;  %v1647_v0 = vld [vmem:[#allocation4] ss:$8 sps:$4 sm:$0xff]  }
  0x53   :  { %v1650_v1 = vld [vmem:[#allocation4 + $0x100] ss:$8 sps:$4 sm:$0xff]   ;;  %v1655_v2 = vld [vmem:[#allocation4 + $0xf4] ss:$8 sps:$4 sm:$0xff]   ;;  %v1653_v4 = vld [vmem:[#allocation4 + $0xf0] ss:$8 sps:$4 sm:$0xff]  }
  0x54   :  { %340 = vmatpush1.bf16.msra.mxu0 %v1590_v23  ;;  %383 = vmatpush1.bf16.msra.mxu1 %v1591_v24  ;;  %v1658_v3 = vld [vmem:[#allocation4 + $0x1f4] ss:$8 sps:$4 sm:$0xff]   ;;  %v1656_v5 = vld [vmem:[#allocation4 + $0x1f0] ss:$8 sps:$4 sm:$0xff]   ;;  %v1661_v6 = vld [vmem:[#allocation4 + $0xe4] ss:$8 sps:$4 sm:$0xff]  }
  0x55   :  { %341 = vmatprep.subr.bf16.mxu0 %v1592_v25  ;;  %384 = vmatprep.subr.bf16.mxu1 %v1594_v26  ;;  %v1664_v7 = vld [vmem:[#allocation4 + $0x1e4] ss:$8 sps:$4 sm:$0xff]   ;;  %v1659_v8 = vld [vmem:[#allocation4 + $0xe0] ss:$8 sps:$4 sm:$0xff]   ;;  %v1667_v10 = vld [vmem:[#allocation4 + $0xd4] ss:$8 sps:$4 sm:$0xff]  }
  0x56   :  { %v1662_v9 = vld [vmem:[#allocation4 + $0x1e0] ss:$8 sps:$4 sm:$0xff]   ;;  %v1670_v11 = vld [vmem:[#allocation4 + $0x1d4] ss:$8 sps:$4 sm:$0xff]   ;;  %v1665_v12 = vld [vmem:[#allocation4 + $0xd0] ss:$8 sps:$4 sm:$0xff]  }
  0x57   :  { %v1668_v13 = vld [vmem:[#allocation4 + $0x1d0] ss:$8 sps:$4 sm:$0xff]   ;;  %v1673_v14 = vld [vmem:[#allocation4 + $0xc4] ss:$8 sps:$4 sm:$0xff]   ;;  %v1671_v16 = vld [vmem:[#allocation4 + $0xc0] ss:$8 sps:$4 sm:$0xff]  }
  0x58   :  { %342 = vmatpush1.bf16.msra.mxu0 %v1596_v27  ;;  %385 = vmatpush1.bf16.msra.mxu1 %v1597_v28  ;;  %v1676_v15 = vld [vmem:[#allocation4 + $0x1c4] ss:$8 sps:$4 sm:$0xff]   ;;  %v1674_v17 = vld [vmem:[#allocation4 + $0x1c0] ss:$8 sps:$4 sm:$0xff]   ;;  %v1679_v18 = vld [vmem:[#allocation4 + $0xb4] ss:$8 sps:$4 sm:$0xff]  }
  0x59   :  { %343 = vmatprep.subr.bf16.mxu0 %v1598_v29  ;;  %386 = vmatprep.subr.bf16.mxu1 %v1600_v30  ;;  %v1682_v19 = vld [vmem:[#allocation4 + $0x1b4] ss:$8 sps:$4 sm:$0xff]   ;;  %v1677_v20 = vld [vmem:[#allocation4 + $0xb0] ss:$8 sps:$4 sm:$0xff]   ;;  %v1685_v22 = vld [vmem:[#allocation4 + $0xa4] ss:$8 sps:$4 sm:$0xff]  }
  0x5a   :  { %v1680_v21 = vld [vmem:[#allocation4 + $0x1b0] ss:$8 sps:$4 sm:$0xff]   ;;  %v1688_v23 = vld [vmem:[#allocation4 + $0x1a4] ss:$8 sps:$4 sm:$0xff]   ;;  %v1683_v24 = vld [vmem:[#allocation4 + $0xa0] ss:$8 sps:$4 sm:$0xff]  }
  0x5b   :  { %v1686_v25 = vld [vmem:[#allocation4 + $0x1a0] ss:$8 sps:$4 sm:$0xff]   ;;  %v1691_v26 = vld [vmem:[#allocation4 + $0x94] ss:$8 sps:$4 sm:$0xff]   ;;  %v1689_v28 = vld [vmem:[#allocation4 + $0x90] ss:$8 sps:$4 sm:$0xff]  }
  0x5c   :  { %344 = vmatpush1.bf16.msra.mxu0 %v1602_v31  ;;  %387 = vmatpush1.bf16.msra.mxu1 %v1603_v32  ;;  %v1694_v27 = vld [vmem:[#allocation4 + $0x194] ss:$8 sps:$4 sm:$0xff]   ;;  %v1692_v29 = vld [vmem:[#allocation4 + $0x190] ss:$8 sps:$4 sm:$0xff]   ;;  %v1697_v30 = vld [vmem:[#allocation4 + $0x84] ss:$8 sps:$4 sm:$0xff]  }
  0x5d   :  { %823 = vmatprep.subr.bf16.mxu0 %v1607_v33  ;;  %866 = vmatprep.subr.bf16.mxu1 %v1610_v34  ;;  %v1700_v31 = vld [vmem:[#allocation4 + $0x184] ss:$8 sps:$4 sm:$0xff]   ;;  %v1695_v32 = vld [vmem:[#allocation4 + $0x80] ss:$8 sps:$4 sm:$0xff]   ;;  %v1701_v34 = vld [vmem:[#allocation6 + $0x78] sm:$0xff]  }
  0x5e   :  { %v1698_v33 = vld [vmem:[#allocation4 + $0x180] ss:$8 sps:$4 sm:$0xff]  }
  0x5f   :  { %362 = vmatmul.mubr.bf16.vlgmr.msra.gmra.mxu0 %v1604_v35  ;;  %405 = vmatmul.mubr.bf16.vlgmr.msra.gmra.mxu1 %v1604_v35  ;;  %v143_v35 = vlaneseq }
  0x60   :  { %824 = vmatpush1.bf16.msra.mxu0 %v1605_v36  ;;  %867 = vmatpush1.bf16.msra.mxu1 %v1608_v37 }
  0x61   :  { %825 = vmatprep.subr.bf16.mxu0 %v1613_v38  ;;  %868 = vmatprep.subr.bf16.mxu1 %v1616_v39  ;;  %v1940_v36 = vshrl.u32 %v143_v35, 7 }
  0x63   :  { %v149_v37 = vsub.s32 1, %v1940_v36  ;;  %v157_v38 = vsub.s32 3, %v1940_v36  ;;  %v145_v39 = vsub.s32 0, %v1940_v36 }
  0x64   :  { %826 = vmatpush1.bf16.msra.mxu0 %v1611_v40  ;;  %869 = vmatpush1.bf16.msra.mxu1 %v1614_v41  ;;  %v153_v40 = vsub.s32 2, %v1940_v36  ;;  %v141_v41 = vld [vmem:[%s1995_s2] sm:$0xf] }
  0x65   :  { %827 = vmatprep.subr.bf16.mxu0 %v1619_v42  ;;  %870 = vmatprep.subr.bf16.mxu1 %v1622_v43 }
  0x68   :  { %828 = vmatpush1.bf16.msra.mxu0 %v1617_v44  ;;  %871 = vmatpush1.bf16.msra.mxu1 %v1620_v45  ;;  %v150_v44 = vrot.slane %v141_v41, %v149_v37  ;;  %v158_v45 = vrot.slane %v141_v41, %v157_v38 }
  0x69   :  { %829 = vmatprep.subr.bf16.mxu0 %v1625_v46  ;;  %872 = vmatprep.subr.bf16.mxu1 %v1628_v47  ;;  %v146_v46 = vrot.slane %v141_v41, %v145_v39  ;;  %v154_v47 = vrot.slane %v141_v41, %v153_v40 }
  0x6c   :  { %830 = vmatpush1.bf16.msra.mxu0 %v1623_v48  ;;  %873 = vmatpush1.bf16.msra.mxu1 %v1626_v49 }
  0x6d   :  { %831 = vmatprep.subr.bf16.mxu0 %v1631_v50  ;;  %874 = vmatprep.subr.bf16.mxu1 %v1634_v51 }
  0x70   :  { %832 = vmatpush1.bf16.msra.mxu0 %v1629_v52  ;;  %875 = vmatpush1.bf16.msra.mxu1 %v1632_v53 }
  0x71   :  { %833 = vmatprep.subr.bf16.mxu0 %v1637_v54  ;;  %876 = vmatprep.subr.bf16.mxu1 %v1640_v55 }
  0x74   :  { %834 = vmatpush1.bf16.msra.mxu0 %v1635_v56  ;;  %877 = vmatpush1.bf16.msra.mxu1 %v1638_v57 }
  0x75   :  { %835 = vmatprep.subr.bf16.mxu0 %v1643_v58  ;;  %878 = vmatprep.subr.bf16.mxu1 %v1646_v59 }
  0x78   :  { %836 = vmatpush1.bf16.msra.mxu0 %v1641_v60  ;;  %879 = vmatpush1.bf16.msra.mxu1 %v1644_v61 }
  0x79   :  { %837 = vmatprep.subr.bf16.mxu0 %v1649_v62  ;;  %880 = vmatprep.subr.bf16.mxu1 %v1652_v63 }
  0x7c   :  { %838 = vmatpush1.bf16.msra.mxu0 %v1647_v0  ;;  %881 = vmatpush1.bf16.msra.mxu1 %v1650_v1 }
  0x7d   :  { %839 = vmatprep.subr.bf16.mxu0 %v1655_v2  ;;  %882 = vmatprep.subr.bf16.mxu1 %v1658_v3 }
  0x80   :  { %840 = vmatpush2.bf16.msra.mxu0 %v1653_v4  ;;  %883 = vmatpush2.bf16.msra.mxu1 %v1656_v5 }
  0x81   :  { %841 = vmatprep.subr.bf16.mxu0 %v1661_v6  ;;  %884 = vmatprep.subr.bf16.mxu1 %v1664_v7 }
  0x84   :  { %842 = vmatpush2.bf16.msra.mxu0 %v1659_v8  ;;  %885 = vmatpush2.bf16.msra.mxu1 %v1662_v9  ;;  %v1702_v8 = vld [vmem:[#allocation6 + $0x38] sm:$0xff]  }
  0x85   :  { %843 = vmatprep.subr.bf16.mxu0 %v1667_v10  ;;  %886 = vmatprep.subr.bf16.mxu1 %v1670_v11  ;;  %v1703_v11 = vld [vmem:[#allocation6 + $0x70] sm:$0xff]  }
  0x88   :  { %844 = vmatpush2.bf16.msra.mxu0 %v1665_v12  ;;  %887 = vmatpush2.bf16.msra.mxu1 %v1668_v13  ;;  %v1704_v12 = vld [vmem:[#allocation6 + $0x30] sm:$0xff]   ;;  %v1705_v13 = vld [vmem:[#allocation6 + $0x68] sm:$0xff]  }
  0x89   :  { %845 = vmatprep.subr.bf16.mxu0 %v1673_v14  ;;  %888 = vmatprep.subr.bf16.mxu1 %v1676_v15  ;;  %v1706_v14 = vld [vmem:[#allocation6 + $0x28] sm:$0xff]   ;;  %v1707_v15 = vld [vmem:[#allocation6 + $0x60] sm:$0xff]  }
  0x8c   :  { %846 = vmatpush2.bf16.msra.mxu0 %v1671_v16  ;;  %889 = vmatpush2.bf16.msra.mxu1 %v1674_v17  ;;  %v1708_v16 = vld [vmem:[#allocation6 + $0x20] sm:$0xff]   ;;  %v1709_v17 = vld [vmem:[#allocation6 + $0x58] sm:$0xff]  }
  0x8d   :  { %847 = vmatprep.subr.bf16.mxu0 %v1679_v18  ;;  %890 = vmatprep.subr.bf16.mxu1 %v1682_v19  ;;  %v1710_v18 = vld [vmem:[#allocation6 + $0x18] sm:$0xff]   ;;  %v1711_v19 = vld [vmem:[#allocation6 + $0x50] sm:$0xff]  }
  0x90   :  { %848 = vmatpush2.bf16.msra.mxu0 %v1677_v20  ;;  %891 = vmatpush2.bf16.msra.mxu1 %v1680_v21  ;;  %v1712_v20 = vld [vmem:[#allocation6 + $0x10] sm:$0xff]   ;;  %v1713_v21 = vld [vmem:[#allocation6 + $0x48] sm:$0xff]  }
  0x91   :  { %849 = vmatprep.subr.bf16.mxu0 %v1685_v22  ;;  %892 = vmatprep.subr.bf16.mxu1 %v1688_v23  ;;  %v1714_v22 = vld [vmem:[#allocation6 + $0x8] sm:$0xff]   ;;  %v1715_v23 = vld [vmem:[#allocation6 + $0x40] sm:$0xff]  }
  0x94   :  { %850 = vmatpush2.bf16.msra.mxu0 %v1683_v24  ;;  %893 = vmatpush2.bf16.msra.mxu1 %v1686_v25  ;;  %v1716_v24 = vld [vmem:[#allocation6] sm:$0xff]   ;;  %v1717_v25 = vld [vmem:[#allocation7 + $0x38] sm:$0xff]  }
  0x95   :  { %851 = vmatprep.subr.bf16.mxu0 %v1691_v26  ;;  %894 = vmatprep.subr.bf16.mxu1 %v1694_v27  ;;  %v1851_v26 = vmov 0.0   ;;  %v1718_v27 = vld [vmem:[#allocation7 + $0x30] sm:$0xff]  }
  0x98   :  { %852 = vmatpush2.bf16.msra.mxu0 %v1689_v28  ;;  %895 = vmatpush2.bf16.msra.mxu1 %v1692_v29  ;;  %v1719_v28 = vld [vmem:[#allocation7 + $0x28] sm:$0xff]   ;;  %v1720_v29 = vld [vmem:[#allocation7 + $0x20] sm:$0xff]  }
  0x99   :  { %853 = vmatprep.subr.bf16.mxu0 %v1697_v30  ;;  %896 = vmatprep.subr.bf16.mxu1 %v1700_v31  ;;  %v491_v30 = vld [vmem:[%s1997_s4] sm:$0x3] }
  0x9a   :  { %v500_v31 = vrot.slane %v491_v30, %v149_v37 }
  0x9c   :  { %854 = vmatpush2.bf16.msra.mxu0 %v1695_v32  ;;  %897 = vmatpush2.bf16.msra.mxu1 %v1698_v33  ;;  %v496_v32 = vrot.slane %v491_v30, %v145_v39 }
  0x9d   :  { %1462 = vmatprep.subr.bf16.mxu0 %v1701_v34  ;;  %1502 = vmatprep.subr.bf16.mxu1 %v1851_v26 }
 0x11f   :  { %v363_v42 = vpop.f32.mrf.mxu0  ;;  %v406_v43 = vpop.f32.mrf.mxu1 }
 0x120   :  { %v364_v56 = vadd.f32 %v363_v42, %v146_v46  ;;  %v407_v57 = vadd.f32 %v406_v43, %v154_v47 }
 0x121   :  { %v365_v48 = vpop.f32.mrf.mxu0  ;;  %v408_v49 = vpop.f32.mrf.mxu1 }
 0x122   :  { %v366_v52 = vadd.f32 %v365_v48, %v150_v44  ;;  %v409_v53 = vadd.f32 %v408_v49, %v158_v45  ;;  %v415_v4 = vmax.f32 %v364_v56, 0.0  ;;  %v417_v5 = vmax.f32 %v407_v57, 0.0  ;;  %v1722_v56 = vld [vmem:[#allocation7 + $0x10] sm:$0xff]   ;;  %v1723_v57 = vld [vmem:[#allocation7 + $0x8] sm:$0xff]  }
 0x123   :  { %v367_v50 = vpop.f32.mrf.mxu0  ;;  %v410_v51 = vpop.f32.mrf.mxu1 }
 0x124   :  { %v368_v54 = vadd.f32 %v367_v50, %v146_v46  ;;  %v411_v55 = vadd.f32 %v410_v51, %v154_v47  ;;  %v416_v0 = vmax.f32 %v366_v52, 0.0  ;;  %v418_v1 = vmax.f32 %v409_v53, 0.0 }
 0x125   :  { %v369_v58 = vpop.f32.mrf.mxu0  ;;  %v412_v59 = vpop.f32.mrf.mxu1 }
 0x126   :  { %v370_v60 = vadd.f32 %v369_v58, %v150_v44  ;;  %v413_v61 = vadd.f32 %v412_v59, %v158_v45  ;;  %v419_v62 = vmax.f32 %v368_v54, 0.0  ;;  %v421_v63 = vmax.f32 %v411_v55, 0.0  ;;  %v1721_v55 = vld [vmem:[#allocation7 + $0x18] sm:$0xff]   ;;  %v1724_v58 = vld [vmem:[#allocation7] sm:$0xff]  }
 0x127   :  { %v1725_v59 = vld [vmem:[#allocation9 + $0x38] sm:$0xff]  }
 0x128   :  { %v420_v2 = vmax.f32 %v370_v60, 0.0  ;;  %v422_v3 = vmax.f32 %v413_v61, 0.0  ;;  %v423_v9 = vpack.c.bf16 %v419_v62, %v415_v4  ;;  %v425_v10 = vpack.c.bf16 %v421_v63, %v417_v5  ;;  %v1726_v60 = vld [vmem:[#allocation9 + $0x30] sm:$0xff]   ;;  %v1727_v61 = vld [vmem:[#allocation9 + $0x28] sm:$0xff]   ;;  %v1728_v62 = vld [vmem:[#allocation9 + $0x20] sm:$0xff]  }
 0x129   :  { %v1729_v63 = vld [vmem:[#allocation9 + $0x18] sm:$0xff]  }
 0x12a   :  { %v424_v6 = vpack.c.bf16 %v420_v2, %v416_v0  ;;  %v426_v7 = vpack.c.bf16 %v422_v3, %v418_v1  ;;  %v1427_v3 = vld [vmem:[%s1999_s6] ss:$0 sm:$0xff] }
 0x12c   :  { %855 = vmatprep.mubr.bf16.mxu0 %v424_v6  ;;  %898 = vmatprep.mubr.bf16.mxu1 %v426_v7 }
 0x12d   :  { %856 = vmatmul.mubr.bf16.vlgmr.msra.gmra.mxu0 %v423_v9  ;;  %899 = vmatmul.mubr.bf16.vlgmr.msra.gmra.mxu1 %v425_v10 }
 0x12e   :  { %1463 = vmatpush3.bf16.msra.mxu0 %v1702_v8  ;;  %1503 = vmatpush3.bf16.msra.mxu1 %v1717_v25  ;;  %v1453_v25 = vld [vmem:[%s2003_s10] ss:$0 sm:$0xff] }
 0x12f   :  { %1464 = vmatprep.subr.bf16.mxu0 %v1703_v11  ;;  %1504 = vmatprep.subr.bf16.mxu1 %v1851_v26 }
 0x130   :  { %1518 = vmatprep.mubr.msk.bf16.mxu1 %vm1852_vm0, %v1851_v26 }
 0x132   :  { %1465 = vmatpush3.bf16.msra.mxu0 %v1704_v12  ;;  %1505 = vmatpush3.bf16.msra.mxu1 %v1718_v27  ;;  %v1730_v12 = vld [vmem:[#allocation9 + $0x10] sm:$0xff]  }
 0x133   :  { %1466 = vmatprep.subr.bf16.mxu0 %v1705_v13  ;;  %1506 = vmatprep.subr.bf16.mxu1 %v1851_v26  ;;  %v1731_v13 = vld [vmem:[#allocation9 + $0x8] sm:$0xff]  }
 0x136   :  { %1467 = vmatpush3.bf16.msra.mxu0 %v1706_v14  ;;  %1507 = vmatpush3.bf16.msra.mxu1 %v1719_v28  ;;  %v1732_v14 = vld [vmem:[#allocation9] sm:$0xff]  }
 0x137   :  { %1468 = vmatprep.subr.bf16.mxu0 %v1707_v15  ;;  %1508 = vmatprep.subr.bf16.mxu1 %v1851_v26  ;;  %v1444_v15 = vld [vmem:[%s2001_s8] ss:$0 sm:$0xff] }
 0x13a   :  { %1469 = vmatpush3.bf16.msra.mxu0 %v1708_v16  ;;  %1509 = vmatpush3.bf16.msra.mxu1 %v1720_v29 }
 0x13b   :  { %1470 = vmatprep.subr.bf16.mxu0 %v1709_v17  ;;  %1510 = vmatprep.subr.bf16.mxu1 %v1851_v26 }
 0x13e   :  { %1471 = vmatpush3.bf16.msra.mxu0 %v1710_v18  ;;  %1511 = vmatpush3.bf16.msra.mxu1 %v1721_v55 }
 0x13f   :  { %1472 = vmatprep.subr.bf16.mxu0 %v1711_v19  ;;  %1512 = vmatprep.subr.bf16.mxu1 %v1851_v26 }
 0x142   :  { %1473 = vmatpush3.bf16.msra.mxu0 %v1712_v20  ;;  %1513 = vmatpush3.bf16.msra.mxu1 %v1722_v56 }
 0x143   :  { %1474 = vmatprep.subr.bf16.mxu0 %v1713_v21  ;;  %1514 = vmatprep.subr.bf16.mxu1 %v1851_v26 }
 0x146   :  { %1475 = vmatpush3.bf16.msra.mxu0 %v1714_v22  ;;  %1515 = vmatpush3.bf16.msra.mxu1 %v1723_v57 }
 0x147   :  { %1476 = vmatprep.subr.bf16.mxu0 %v1715_v23  ;;  %1516 = vmatprep.subr.bf16.mxu1 %v1851_v26 }
 0x14a   :  { %1477 = vmatpush3.bf16.msra.mxu0 %v1716_v24  ;;  %1517 = vmatpush3.bf16.msra.mxu1 %v1724_v58 }
 0x14b   :  { %1522 = vmatprep.subr.bf16.mxu0 %v1851_v26 }
 0x1ed   :  { %v857_v33 = vpop.f32.mrf.mxu0  ;;  %v900_v34 = vpop.f32.mrf.mxu1 }
 0x1ee   :  { %v858_v41 = vadd.f32 %v857_v33, %v496_v32 }
 0x1ef   :  { %v859_v35 = vpop.f32.mrf.mxu0  ;;  %v902_v38 = vpop.f32.mrf.mxu1 }
 0x1f0   :  { %v860_v40 = vadd.f32 %v859_v35, %v500_v31  ;;  %v901_v49 = vadd.f32 %v900_v34, %v858_v41 }
 0x1f1   :  { %v861_v42 = vpop.f32.mrf.mxu0  ;;  %v904_v43 = vpop.f32.mrf.mxu1 }
 0x1f2   :  { %v862_v44 = vadd.f32 %v861_v42, %v496_v32  ;;  %v903_v46 = vadd.f32 %v902_v38, %v860_v40  ;;  %v909_v39 = vmax.f32 %v901_v49, 0.0 }
 0x1f3   :  { %v863_v45 = vpop.f32.mrf.mxu0  ;;  %v906_v50 = vpop.f32.mrf.mxu1 }
 0x1f4   :  { %v905_v47 = vadd.f32 %v904_v43, %v862_v44  ;;  %v864_v48 = vadd.f32 %v863_v45, %v500_v31  ;;  %v910_v52 = vmax.f32 %v903_v46, 0.0 }
 0x1f6   :  { %v907_v51 = vadd.f32 %v906_v50, %v864_v48  ;;  %v911_v37 = vmax.f32 %v905_v47, 0.0 }
 0x1f8   :  { %v912_v36 = vmax.f32 %v907_v51, 0.0  ;;  %v913_v54 = vpack.c.bf16 %v911_v37, %v909_v39 }
 0x1fa   :  { %v914_v53 = vpack.c.bf16 %v912_v36, %v910_v52 }
 0x1fc   :  { %1082 = vmatprep.mubr.bf16.mxu0 %v914_v53 }
 0x1fd   :  { %1083 = vmatmul.mubr.bf16.vlgmr.msra.gmra.mxu0 %v913_v54 }
 0x1fe   :  { %1538 = vmatprep.mubr.msk.bf16.mxu0 %vm1852_vm0, %v1851_v26  ;;  %1523 = vmatpush3.bf16.msra.mxu0 %v1725_v59 }
 0x1ff   :  { %1524 = vmatprep.subr.bf16.mxu0 %v1851_v26 }
 0x202   :  { %1525 = vmatpush3.bf16.msra.mxu0 %v1726_v60 }
 0x203   :  { %1526 = vmatprep.subr.bf16.mxu0 %v1851_v26 }
 0x206   :  { %1527 = vmatpush3.bf16.msra.mxu0 %v1727_v61 }
 0x207   :  { %1528 = vmatprep.subr.bf16.mxu0 %v1851_v26 }
 0x20a   :  { %1529 = vmatpush3.bf16.msra.mxu0 %v1728_v62 }
 0x20b   :  { %1530 = vmatprep.subr.bf16.mxu0 %v1851_v26 }
 0x20e   :  { %1531 = vmatpush3.bf16.msra.mxu0 %v1729_v63 }
 0x20f   :  { %1532 = vmatprep.subr.bf16.mxu0 %v1851_v26 }
 0x212   :  { %1533 = vmatpush3.bf16.msra.mxu0 %v1730_v12 }
 0x213   :  { %1534 = vmatprep.subr.bf16.mxu0 %v1851_v26 }
 0x216   :  { %1535 = vmatpush3.bf16.msra.mxu0 %v1731_v13 }
 0x217   :  { %1536 = vmatprep.subr.bf16.mxu0 %v1851_v26 }
 0x21a   :  { %1537 = vmatpush3.bf16.msra.mxu0 %v1732_v14 }
 0x2bd   :  { %v1478_v0 = vpop.f32.mrf.mxu0 }
 0x2bf   :  { %v1479_v1 = vpop.f32.mrf.mxu0 }
 0x2c0   :  { %v1480_v2 = vadd.f32 %v1479_v1, %v1478_v0 }
 0x2c1   :  { %v1481_v4 = vpop.f32.mrf.mxu0 }
 0x2c2   :  { %v1085_v6 = vadd.f32 %v1480_v2, %v1427_v3 }
 0x2c3   :  { %v1482_v5 = vpop.f32.mrf.mxu0 }
 0x2c4   :  { %v1483_v7 = vadd.f32 %v1482_v5, %v1481_v4  ;;  %v1091_v9 = vmax.f32 %v1085_v6, 0.0 }
 0x2c6   :  { %v1088_v8 = vadd.f32 %v1483_v7, %v1427_v3 }
 0x2c8   :  { %v1092_v10 = vmax.f32 %v1088_v8, 0.0 }
 0x2ca   :  { %v1093_v11 = vpack.c.bf16 %v1092_v10, %v1091_v9 }
 0x2cc   :  { %1519 = vmatmul.mubr.bf16.vlgmr.msra.gmra.mxu1 %v1093_v11 }
 0x38c   :  { %v1199_v16 = vpop.f32.mrf.mxu1 }
 0x38d   :  { %v1200_v18 = vadd.f32 %v1444_v15, %v1199_v16 }
 0x38e   :  { %v1520_v17 = vpop.f32.mrf.mxu1 }
 0x38f   :  { %v1206_v22 = vmax.f32 %v1200_v18, 0.0 }
 0x390   :  { %v1202_v19 = vpop.f32.mrf.mxu1 }
 0x391   :  { %v1203_v20 = vadd.f32 %v1444_v15, %v1202_v19 }
 0x392   :  { %v1521_v21 = vpop.f32.mrf.mxu1 }
 0x393   :  { %v1207_v23 = vmax.f32 %v1203_v20, 0.0 }
 0x395   :  { %v1208_v24 = vpack.c.bf16 %v1207_v23, %v1206_v22 }
 0x397   :  { %1539 = vmatmul.mubr.bf16.vlgmr.msra.gmra.mxu0 %v1208_v24 }
 0x457   :  { %v1314_v26 = vpop.f32.mrf.mxu0 }
 0x458   :  { %v1315_v27 = vadd.f32 %v1453_v25, %v1314_v26 }
 0x459   :  { %v1540_v28 = vpop.f32.mrf.mxu0 }
 0x45a   :  { %1321 = vst [vmem:[%s2004_s11] sm:$0xff] %v1315_v27 }
 0x45b   :  { %v1317_v29 = vpop.f32.mrf.mxu0 }
 0x45c   :  { %v1318_v30 = vadd.f32 %v1453_v25, %v1317_v29 }
 0x45d   :  { %v1541_v31 = vpop.f32.mrf.mxu0 }
 0x45e   :  { %1322 = vst [vmem:[%s2004_s11 + $0x8] sm:$0xff] %v1318_v30 }
 0x45f   :  { %1327 = vsyncpa [#allocation3], 1 }
 0x460   :  { %1328 = vsyncpa [#allocation5], 1 }
 0x461   :  { %1329 = vsyncpa [#allocation8], 1 }

</bundles_post_ra>
